<compile_context>
chip_gen: v7x
topology: tpu7x:2x2x1
jax: 0.10.0
libtpu: 0.0.40
codegen_flags: <defaults>
</compile_context>

<pallas_src>
import jax
import jax.numpy as jnp
from jax.experimental import pallas as pl
from jax.experimental.pallas import tpu as pltpu


def _copy_kernel(x_ref, o_ref):
    # Pure blocked memcpy; the "shuffle" is entirely expressed by the free
    # wrapper-side reshapes (contiguous view), so the kernel just streams
    # bytes HBM -> VMEM -> HBM.
    o_ref[...] = x_ref[...]


_TARGET_BLOCK_BYTES = 4 * 1024 * 1024   # ~4 MiB/buffer: amortizes ~0.35us/step
                                        # DMA-setup cost, fits v7x's 64 MiB VMEM
                                        # with in+out double buffering.
_VMEM_LIMIT_BYTES = 32 * 1024 * 1024    # raise v5e's 16 MiB scoped default while
                                        # staying within every gen's physical VMEM.


def _pick_lane_width(total):
    # Largest lane-dense width (multiple of 128) that divides the flattened
    # element count; capped so large arrays keep a multi-row layout to tile.
    for n in (4096, 2048, 1024, 512, 256, 128):
        if total % n == 0:
            return n
    return None


def _pick_row_block(m, bytes_per_row):
    # Pick a row-block that divides m, is sublane-aligned (multiple of 8) or
    # equal to m, and keeps each block around _TARGET_BLOCK_BYTES.
    if m <= 1:
        return m
    max_rows = max(1, _TARGET_BLOCK_BYTES // bytes_per_row)
    if max_rows >= m:
        return m
    for r in range(min(m, max_rows), 0, -1):
        if m % r == 0 and r % 8 == 0:
            return r
    # No aligned divisor <= max_rows: fall back to the full dim (still valid).
    return m


def pixel_shuffle_1d(x: jax.Array, factor: int) -> jax.Array:
    b, fc, h, w = x.shape
    assert fc % factor == 0, "channel dim must be divisible by factor"
    c = fc // factor
    out_4d = (b, c, h * factor, w)

    total = b * fc * h * w
    itemsize = jnp.dtype(x.dtype).itemsize
    lane = _pick_lane_width(total)

    if lane is None:
        # Total element count not divisible by 128: copy the whole array as a
        # single full-dims block (correct, lane-padded).
        # TODO(synk): tile non-128-divisible sizes instead of one big block.
        flat = pl.pallas_call(
            _copy_kernel,
            out_shape=jax.ShapeDtypeStruct(x.shape, x.dtype),
            grid_spec=pltpu.PrefetchScalarGridSpec(
                num_scalar_prefetch=0,
                grid=(1,),
                in_specs=[pl.BlockSpec(x.shape, lambda i: (0,) * 4)],
                out_specs=pl.BlockSpec(x.shape, lambda i: (0,) * 4),
            ),
            compiler_params=pltpu.CompilerParams(
                dimension_semantics=("arbitrary",),
                vmem_limit_bytes=_VMEM_LIMIT_BYTES,
            ),
        )(x)
        return flat.reshape(out_4d)

    m = total // lane
    row_blk = _pick_row_block(m, lane * itemsize)
    grid = (m // row_blk,)

    # Free contiguous view into a lane-dense 2D slab.
    x2 = x.reshape(m, lane)

    out2 = pl.pallas_call(
        _copy_kernel,
        out_shape=jax.ShapeDtypeStruct((m, lane), x.dtype),
        grid_spec=pltpu.PrefetchScalarGridSpec(
            num_scalar_prefetch=0,
            grid=grid,
            in_specs=[pl.BlockSpec((row_blk, lane), lambda i: (i, 0))],
            out_specs=pl.BlockSpec((row_blk, lane), lambda i: (i, 0)),
        ),
        compiler_params=pltpu.CompilerParams(
            dimension_semantics=("parallel",),   # disjoint output blocks, no accumulator
            vmem_limit_bytes=_VMEM_LIMIT_BYTES,
        ),
    )(x2)

    # Free contiguous view back to the PixelShuffle1D output layout.
    return out2.reshape(out_4d)


def pixel_shuffle_1d_ref(x: jax.Array, factor: int) -> jax.Array:
    b, fc, h, w = x.shape
    c = fc // factor
    return x.reshape(b, c, h * factor, w)


if __name__ == "__main__":
    key = jax.random.PRNGKey(0)
    factor = 2
    b, fc, h, w = 2, 4, 16, 16  # small NCHW example, fc divisible by factor
    x = jax.random.normal(key, (b, fc, h, w), dtype=jnp.float32)

    out = pixel_shuffle_1d(x, factor)
    out = jax.block_until_ready(out)

    ref = pixel_shuffle_1d_ref(x, factor)
    assert out.shape == (b, fc // factor, h * factor, w)
    assert out.dtype == x.dtype
    assert jnp.array_equal(out, ref), "Pallas output mismatch vs reference reshape"

    print("KERNEL_OK")
</pallas_src>

<mosaic_0001>
module attributes {stable_mosaic.version = 11 : i64} {
  func.func @_copy_kernel(%arg0: i32, %arg1: memref<1x2048xf32, #tpu.memory_space<vmem>>, %arg2: memref<1x2048xf32, #tpu.memory_space<vmem>>) attributes {dimension_semantics = [#tpu.dimension_semantics<parallel>], iteration_bounds = array<i64: 1>, scalar_prefetch = 0 : i64, scratch_operands = 0 : i64, tpu.core_type = #tpu.core_type<tc>, window_params = [{transform_indices = @transform_0, window_bounds = array<i64: 1, 2048>}, {transform_indices = @transform_1, window_bounds = array<i64: 1, 2048>}]} {
    %c0 = arith.constant 0 : index
    %c0_0 = arith.constant 0 : index
    %0 = vector.load %arg1[%c0, %c0_0] : memref<1x2048xf32, #tpu.memory_space<vmem>>, vector<1x2048xf32>
    %c0_1 = arith.constant 0 : index
    %c0_2 = arith.constant 0 : index
    %1 = vector.load %arg2[%c0_1, %c0_2] : memref<1x2048xf32, #tpu.memory_space<vmem>>, vector<1x2048xf32>
    tpu.vector_store %arg2[%c0_1, %c0_2], %0 {strides = array<i32>} : memref<1x2048xf32, #tpu.memory_space<vmem>>, vector<1x2048xf32>,
    return
  }
  func.func @transform_0(%arg0: i32) -> (i32, i32) {
    %c0_i32 = arith.constant 0 : i32
    %c0_i32_0 = arith.constant 0 : i32
    return %arg0, %c0_i32 : i32, i32
  }
  func.func @transform_1(%arg0: i32) -> (i32, i32) {
    %c0_i32 = arith.constant 0 : i32
    %c0_i32_0 = arith.constant 0 : i32
    return %arg0, %c0_i32 : i32, i32
  }
}

</mosaic_0001>

<bundles_post_ra>
// kernel: tpu_custom_call.1
= control target key start
LH: loop header
LB: loop body
LE: loop exit
PB: predicated region body
PF: predicated region fallthrough
CT: control target
= control target key end

     0   :  { %6 = vsyncpa [#allocation3], 0  ;;  %s126_s0 = inlined_call_operand.hbm [shape: f32[1,2048], index: 0, kind: input, shape index: {}]   ;;  %s127_s1 = inlined_call_operand.hbm [shape: f32[1,2048], index: 1, kind: output, shape index: {}]  }
   0x1   :  { %7 = vsyncpa [#allocation4], 0  ;;  %s90_s6 = smov [#allocation2]   ;;  %s42_s10 = scalar_lea.hbm %s126_s0, 256 }
   0x2   :  { %s14_s7 = sshll.u32 %s90_s6, 4  ;;  %p43_p0 = scmp.ne.s32.totalorder %s126_s0, %s42_s10  ;;  %s15_s7 = int_to_ptr.vmem [resolvable:$true] %s14_s7 }
   0x3   :  { %p46_p1 = scmp.lt.u32.totalorder %s42_s10, %s126_s0 }
   0x5   :  { %p48_p2 = pnand %p46_p1, %p43_p0 }
   0x7   :  { %51 = shalt.err (!%p48_p2)
}
   0x8   :  { %s52_s15 = scalar_lea.vmem %s15_s7, 256  ;;  %p57_p4 = scmp.lt.s32.totalorder %s15_s7, %s15_s7 }
   0x9   :  { %p53_p3 = scmp.ne.s32.totalorder %s15_s7, %s52_s15  ;;  %p58_p5 = scmp.lt.s32.totalorder %s52_s15, %s52_s15 }
   0xb   :  { %p59_p6 = por %p58_p5, %p57_p4 }
   0xd   :  { %p60_p7 = pnand %p59_p6, %p53_p3 }
   0xf   :  { %63 = shalt.err (!%p60_p7)
}
  0x10   :  { %17 = dma.hbm_to_vmem [thread:$0]  %s126_s0, 256, %s15_s7, [#allocation3]  }
  0x11   :  { %86 = dma.done.wait [#allocation3], 256  }
  0x12   :  { %87 = vsyncadd [#allocation3], 4294967040  ;;  %s91_s18 = smov [#allocation5]   ;;  %v21_v0 = vld [vmem:[#allocation2] sm:$0xff]  ;;  %v22_v1 = vld [vmem:[#allocation2 + $0x8] sm:$0xff] }
  0x13   :  { %s31_s19 = sshll.u32 %s91_s18, 4  ;;  %23 = vst [vmem:[#allocation5] sm:$0xff] %v21_v0  ;;  %24 = vst [vmem:[#allocation5 + $0x8] sm:$0xff] %v22_v1  ;;  %s32_s19 = int_to_ptr.vmem [resolvable:$true] %s31_s19 }
  0x14   :  { %s64_s20 = scalar_lea.vmem %s32_s19, 256  ;;  %p69_p9 = scmp.lt.s32.totalorder %s32_s19, %s32_s19 }
  0x15   :  { %p65_p8 = scmp.ne.s32.totalorder %s32_s19, %s64_s20  ;;  %p70_p10 = scmp.lt.s32.totalorder %s64_s20, %s64_s20 }
  0x17   :  { %p71_p11 = por %p70_p10, %p69_p9 }
  0x19   :  { %p72_p12 = pnand %p71_p11, %p65_p8 }
  0x1b   :  { %75 = shalt.err (!%p72_p12)
}
  0x1c   :  { %s76_s0 = scalar_lea.hbm %s127_s1, 256 }
  0x1d   :  { %p77_p13 = scmp.ne.s32.totalorder %s127_s1, %s76_s0  ;;  %p80_p0 = scmp.lt.u32.totalorder %s76_s0, %s127_s1 }
  0x1f   :  { %p82_p1 = pnand %p80_p0, %p77_p13 }
  0x21   :  { %85 = shalt.err (!%p82_p1)
}
  0x22   :  { %34 = dma.vmem_to_hbm [thread:$0]  %s32_s19, 256, %s127_s1, [#allocation4]  }
  0x23   :  { %88 = dma.done.wait [#allocation4], 256  }
  0x24   :  { %89 = vsyncadd [#allocation4], 4294967040 }
  0x25   :  { %38 = vsyncpa [#allocation3], 1 }
  0x26   :  { %39 = vsyncpa [#allocation4], 1 }

</bundles_post_ra>
